<compile_context>
chip_gen: v5e
topology: v5e:2x2
jax: 0.10.0
libtpu: 0.0.40
codegen_flags: <defaults>
</compile_context>

<pallas_src>
import functools

import jax
import jax.numpy as jnp
from jax.experimental import pallas as pl
from jax.experimental.pallas import tpu as pltpu


def _round_up(x, m):
    return (x + m - 1) // m * m


_VMEM = pl.BlockSpec(memory_space=pltpu.MemorySpace.VMEM)


# -----------------------------------------------------------------------------
# Pallas kernels
# -----------------------------------------------------------------------------
def _matmul_bias_kernel(x_ref, w_ref, b_ref, o_ref, *, relu):
    """o = relu?(x @ w + b).  x:(tm,K) bf16, w:(K,Np) bf16, b:(1,Np) f32."""
    acc = jnp.dot(x_ref[...], w_ref[...], preferred_element_type=jnp.float32)
    acc = acc + b_ref[...]
    if relu:
        acc = jnp.maximum(acc, 0.0)
    o_ref[...] = acc


def _mlp_kernel(x_ref, w1_ref, b1_ref, g_ref, beta_ref, w2_ref, b2_ref, o_ref):
    """Fused Linear -> BatchNorm1d (training-mode batch stats) -> ReLU -> Linear.

    Un-gridded: BN mean/var must see the FULL batch (axis 0).
    """
    h = jnp.dot(x_ref[...], w1_ref[...], preferred_element_type=jnp.float32)
    h = h + b1_ref[...]
    mean = jnp.mean(h, axis=0, keepdims=True)
    var = jnp.mean((h - mean) * (h - mean), axis=0, keepdims=True)  # biased var
    hn = (h - mean) * jax.lax.rsqrt(var + 1e-5)
    hn = jnp.maximum(hn * g_ref[...] + beta_ref[...], 0.0)
    out = jnp.dot(hn.astype(jnp.bfloat16), w2_ref[...],
                  preferred_element_type=jnp.float32)
    o_ref[...] = out + b2_ref[...]


def _byol_loss_kernel(p_ref, z_ref, o_ref):
    """BYOL-A criterion: per-sample 2 - 2*cos(p, z).  p,z:(B,P)  o:(B,1)."""
    p = p_ref[...]
    z = z_ref[...]
    inv_p = jax.lax.rsqrt(jnp.sum(p * p, axis=-1, keepdims=True) + 1e-12)
    inv_z = jax.lax.rsqrt(jnp.sum(z * z, axis=-1, keepdims=True) + 1e-12)
    o_ref[...] = 2.0 - 2.0 * jnp.sum(p * z, axis=-1, keepdims=True) * inv_p * inv_z


# -----------------------------------------------------------------------------
# Pallas wrappers
# -----------------------------------------------------------------------------
def matmul_bias(x, w, b, *, relu, tm_max=512):
    """x:(M,K) @ w:(K,N) + b, optional ReLU.  Lane-dense (N padded to 128),
    bf16 MXU operands, M tiled with a 'parallel' grid axis."""
    M, K = x.shape
    N = w.shape[1]
    Np = max(128, _round_up(N, 128))
    tm = min(tm_max, _round_up(M, 8))
    Mp = _round_up(M, tm)

    xb = jnp.pad(x.astype(jnp.bfloat16), ((0, Mp - M), (0, 0)))
    wb = jnp.pad(w.astype(jnp.bfloat16), ((0, 0), (0, Np - N)))
    bb = jnp.pad(b.astype(jnp.float32).reshape(1, N), ((0, 0), (0, Np - N)))

    kern = functools.partial(_matmul_bias_kernel, relu=relu)
    out = pl.pallas_call(
        kern,
        out_shape=jax.ShapeDtypeStruct((Mp, Np), jnp.float32),
        grid=(Mp // tm,),
        in_specs=[
            pl.BlockSpec((tm, K), lambda i: (i, 0)),
            pl.BlockSpec((K, Np), lambda i: (0, 0)),   # weight resident across M tiles
            pl.BlockSpec((1, Np), lambda i: (0, 0)),
        ],
        out_specs=pl.BlockSpec((tm, Np), lambda i: (i, 0)),
        compiler_params=pltpu.CompilerParams(dimension_semantics=("parallel",)),
    )(xb, wb, bb)
    return out[:M, :N]


def mlp_network(p, x):
    """Linear -> BN(batch stats) -> ReLU -> Linear, fused into one kernel.
    Hidden / output dims padded to 128 lanes (zero pads are exact no-ops)."""
    M, _ = x.shape
    H = p["w1"].shape[1]
    N = p["w2"].shape[1]
    Hp = max(128, _round_up(H, 128))
    Np = max(128, _round_up(N, 128))

    w1 = jnp.pad(p["w1"].astype(jnp.bfloat16), ((0, 0), (0, Hp - H)))
    b1 = jnp.pad(p["b1"].astype(jnp.float32).reshape(1, H), ((0, 0), (0, Hp - H)))
    g = jnp.pad(p["gamma"].astype(jnp.float32).reshape(1, H), ((0, 0), (0, Hp - H)))
    bt = jnp.pad(p["beta"].astype(jnp.float32).reshape(1, H), ((0, 0), (0, Hp - H)))
    w2 = jnp.pad(p["w2"].astype(jnp.bfloat16), ((0, Hp - H), (0, Np - N)))
    b2 = jnp.pad(p["b2"].astype(jnp.float32).reshape(1, N), ((0, 0), (0, Np - N)))

    out = pl.pallas_call(
        _mlp_kernel,
        out_shape=jax.ShapeDtypeStruct((M, Np), jnp.float32),
        in_specs=[_VMEM] * 7,
        out_specs=_VMEM,
    )(x.astype(jnp.bfloat16), w1, b1, g, bt, w2, b2)
    return out[:, :N]


def byol_loss(p, z):
    B, _ = p.shape
    out = pl.pallas_call(
        _byol_loss_kernel,
        out_shape=jax.ShapeDtypeStruct((B, 1), jnp.float32),
        in_specs=[_VMEM, _VMEM],
        out_specs=_VMEM,
    )(p.astype(jnp.float32), z.astype(jnp.float32))
    return out[:, 0]


# -----------------------------------------------------------------------------
# Conv stack (channels-last glue, matmul in Pallas)
# -----------------------------------------------------------------------------
def conv1d_relu_cl(x_cl, w, b, stride, padding):
    """Conv1d + ReLU on channels-last activations.

    x_cl: (B, L, Cin), w: (Cout, Cin, K) PyTorch layout, b: (Cout,)
    returns (B, Lout, Cout).  stride/padding are static Python ints.
    """
    B, L, Cin = x_cl.shape
    Cout, _, K = w.shape
    xp = jnp.pad(x_cl, ((0, 0), (padding, padding), (0, 0)))
    Lp = L + 2 * padding
    Lout = (Lp - K) // stride + 1
    idx = jnp.arange(Lout)[:, None] * stride + jnp.arange(K)[None, :]   # (Lout, K)
    patches = xp[:, idx, :]                                # (B, Lout, K, Cin)
    patches = patches.reshape(B * Lout, K * Cin)
    wmat = jnp.transpose(w, (2, 1, 0)).reshape(K * Cin, Cout)  # [k*Cin+cin, cout]
    out = matmul_bias(patches, wmat, b, relu=True)         # (B*Lout, Cout)
    return out.reshape(B, Lout, Cout)


def pre_network(conv_params, conv_cfg, x_ncl):
    """Conv1d+ReLU stack.  Input (B, Cin, L) -> output (B, D, T) (PyTorch layout)."""
    out = jnp.transpose(x_ncl, (0, 2, 1))                  # channels-last
    for layer, (stride, pad) in zip(conv_params, conv_cfg):
        out = conv1d_relu_cl(out, layer["w"], layer["b"], stride, pad)
    return jnp.transpose(out, (0, 2, 1))


# -----------------------------------------------------------------------------
# Forward (mirrors WaveBYOLTest01.forward)
# -----------------------------------------------------------------------------
def wave_byol_forward(params, conv_cfg, x01, x02):
    B = x01.shape[0]

    # Both views share the conv stack weights and have no batch-coupled ops,
    # so batch them through pre_network together.
    feats = pre_network(params["pre"], conv_cfg, jnp.concatenate([x01, x02], 0))
    online_x01, online_x02 = feats[:B], feats[B:]
    _, D, T = online_x01.shape
    online_x01_r = online_x01.reshape(B, D * T)
    online_x02_r = online_x02.reshape(B, D * T)

    # MLPs run per-view so BatchNorm training-mode batch stats match PyTorch.
    online_proj01 = mlp_network(params["proj"], online_x01_r)
    online_proj02 = mlp_network(params["proj"], online_x02_r)
    online_pred01 = mlp_network(params["pred"], online_proj01)
    online_pred02 = mlp_network(params["pred"], online_proj02)

    # Target networks are forward-time deep copies of the online networks, so
    # their outputs are byte-identical to the online path; reuse them under
    # stop_gradient instead of recomputing.  (If EMA target updates are added,
    # this dedup must be removed.)
    target_x01 = jax.lax.stop_gradient(online_x01)
    target_x02 = jax.lax.stop_gradient(online_x02)
    target_proj01 = jax.lax.stop_gradient(online_proj01)
    target_proj02 = jax.lax.stop_gradient(online_proj02)

    loss01 = byol_loss(online_pred01, target_proj02)
    loss02 = byol_loss(online_pred02, target_proj01)
    loss = jnp.mean(loss01 + loss02)
    return online_x01, online_x02, target_x01, target_x02, loss


# -----------------------------------------------------------------------------
# Deterministic parameter construction
# -----------------------------------------------------------------------------
def init_params(key, pre_input_dim, pre_hidden_dims, filter_sizes,
                dimension, hidden_size, projection_size):
    n_keys = 2 * len(pre_hidden_dims) + 8
    keys = jax.random.split(key, n_keys)
    ki = iter(range(n_keys))

    pre = []
    cin = pre_input_dim
    for cout, k in zip(pre_hidden_dims, filter_sizes):
        w = 0.1 * jax.random.normal(keys[next(ki)], (cout, cin, k), jnp.float32)
        b = 0.01 * jax.random.normal(keys[next(ki)], (cout,), jnp.float32)
        pre.append({"w": w, "b": b})
        cin = cout

    def mlp(in_dim, hid, out_dim):
        return {
            "w1": 0.05 * jax.random.normal(keys[next(ki)], (in_dim, hid), jnp.float32),
            "b1": 0.01 * jax.random.normal(keys[next(ki)], (hid,), jnp.float32),
            "gamma": jnp.ones((hid,), jnp.float32),
            "beta": jnp.zeros((hid,), jnp.float32),
            "w2": 0.05 * jax.random.normal(keys[next(ki)], (hid, out_dim), jnp.float32),
            "b2": 0.01 * jax.random.normal(keys[next(ki)], (out_dim,), jnp.float32),
        }

    return {
        "pre": pre,
        "proj": mlp(dimension, hidden_size, projection_size),
        "pred": mlp(projection_size, hidden_size, projection_size),
    }


# -----------------------------------------------------------------------------
# Main
# -----------------------------------------------------------------------------
if __name__ == "__main__":
    # Small, shape-consistent configuration:
    #   waveform (B=2, C=1, L=64) -> conv stack -> (B, D=16, T=16)
    #   dimension = D*T = 256, hidden_size = 32, projection_size = 16
    B, Cin, L = 2, 1, 64
    pre_hidden_dims = [8, 16]
    filter_sizes = [4, 4]
    strides = [2, 2]
    paddings = [1, 1]
    dimension = 16 * 16
    hidden_size = 32
    projection_size = 16

    key = jax.random.PRNGKey(0)
    k_x1, k_x2, k_p = jax.random.split(key, 3)
    x01 = jax.random.normal(k_x1, (B, Cin, L), jnp.float32)
    x02 = jax.random.normal(k_x2, (B, Cin, L), jnp.float32)

    params = init_params(k_p, Cin, pre_hidden_dims, filter_sizes,
                         dimension, hidden_size, projection_size)
    conv_cfg = tuple(zip(strides, paddings))     # static conv hyper-params

    fwd = jax.jit(wave_byol_forward, static_argnums=1)
    o1, o2, t1, t2, loss = fwd(params, conv_cfg, x01, x02)
    jax.block_until_ready((o1, o2, t1, t2, loss))

    assert o1.shape == (B, pre_hidden_dims[-1], 16)
    assert o2.shape == (B, pre_hidden_dims[-1], 16)
    assert t1.shape == o1.shape and t2.shape == o2.shape
    assert loss.shape == ()
    assert bool(jnp.isfinite(loss))
    print("KERNEL_OK")
</pallas_src>

<mosaic_0001>
module attributes {stable_mosaic.version = 11 : i64} {
  func.func @_matmul_bias_kernel(%arg0: i32, %arg1: memref<128x4xbf16, #tpu.memory_space<vmem>>, %arg2: memref<4x128xbf16, #tpu.memory_space<vmem>>, %arg3: memref<1x128xf32, #tpu.memory_space<vmem>>, %arg4: memref<128x128xf32, #tpu.memory_space<vmem>>) attributes {dimension_semantics = [#tpu.dimension_semantics<parallel>], iteration_bounds = array<i64: 1>, scalar_prefetch = 0 : i64, scratch_operands = 0 : i64, tpu.core_type = #tpu.core_type<tc>, window_params = [{transform_indices = @transform_0, window_bounds = array<i64: 128, 4>}, {pipeline_mode = #tpu.pipeline_mode<synchronous>, transform_indices = @transform_1, window_bounds = array<i64: 4, 128>}, {pipeline_mode = #tpu.pipeline_mode<synchronous>, transform_indices = @transform_2, window_bounds = array<i64: 1, 128>}, {transform_indices = @transform_3, window_bounds = array<i64: 128, 128>}]} {
    %c0 = arith.constant 0 : index
    %c0_0 = arith.constant 0 : index
    %0 = vector.load %arg1[%c0, %c0_0] : memref<128x4xbf16, #tpu.memory_space<vmem>>, vector<128x4xbf16>
    %c0_1 = arith.constant 0 : index
    %c0_2 = arith.constant 0 : index
    %1 = vector.load %arg2[%c0_1, %c0_2] : memref<4x128xbf16, #tpu.memory_space<vmem>>, vector<4x128xbf16>
    %cst = arith.constant dense<0.000000e+00> : vector<128x128xf32>
    %2 = tpu.matmul %0, %1, %cst {dimension_numbers = #tpu.dot_dimension_numbers<[1], [0], [0], [1], [0, 0, 1, 1], [], []>} : vector<128x4xbf16>, vector<4x128xbf16>, vector<128x128xf32> -> vector<128x128xf32>
    %c0_3 = arith.constant 0 : index
    %c0_4 = arith.constant 0 : index
    %3 = vector.load %arg3[%c0_3, %c0_4] : memref<1x128xf32, #tpu.memory_space<vmem>>, vector<1x128xf32>
    %4 = vector.broadcast %3 : vector<1x128xf32> to vector<128x128xf32>
    %5 = arith.addf %2, %4 : vector<128x128xf32>
    %cst_5 = arith.constant 0.000000e+00 : f32
    %6 = vector.broadcast %cst_5 : f32 to vector<128x128xf32>
    %7 = arith.maximumf %5, %6 : vector<128x128xf32>
    %c0_6 = arith.constant 0 : index
    %c0_7 = arith.constant 0 : index
    %8 = vector.load %arg4[%c0_6, %c0_7] : memref<128x128xf32, #tpu.memory_space<vmem>>, vector<128x128xf32>
    tpu.vector_store %arg4[%c0_6, %c0_7], %7 {strides = array<i32>} : memref<128x128xf32, #tpu.memory_space<vmem>>, vector<128x128xf32>,
    return
  }
  func.func @transform_0(%arg0: i32) -> (i32, i32) {
    %c0_i32 = arith.constant 0 : i32
    %c0_i32_0 = arith.constant 0 : i32
    return %arg0, %c0_i32 : i32, i32
  }
  func.func @transform_1(%arg0: i32) -> (i32, i32) {
    %c0_i32 = arith.constant 0 : i32
    %c0_i32_0 = arith.constant 0 : i32
    %c0_i32_1 = arith.constant 0 : i32
    return %c0_i32, %c0_i32_0 : i32, i32
  }
  func.func @transform_2(%arg0: i32) -> (i32, i32) {
    %c0_i32 = arith.constant 0 : i32
    %c0_i32_0 = arith.constant 0 : i32
    %c0_i32_1 = arith.constant 0 : i32
    return %c0_i32, %c0_i32_0 : i32, i32
  }
  func.func @transform_3(%arg0: i32) -> (i32, i32) {
    %c0_i32 = arith.constant 0 : i32
    %c0_i32_0 = arith.constant 0 : i32
    return %arg0, %c0_i32 : i32, i32
  }
}

module attributes {stable_mosaic.version = 11 : i64} {
  func.func @_matmul_bias_kernel(%arg0: i32, %arg1: memref<64x32xbf16, #tpu.memory_space<vmem>>, %arg2: memref<32x128xbf16, #tpu.memory_space<vmem>>, %arg3: memref<1x128xf32, #tpu.memory_space<vmem>>, %arg4: memref<64x128xf32, #tpu.memory_space<vmem>>) attributes {dimension_semantics = [#tpu.dimension_semantics<parallel>], iteration_bounds = array<i64: 1>, scalar_prefetch = 0 : i64, scratch_operands = 0 : i64, tpu.core_type = #tpu.core_type<tc>, window_params = [{transform_indices = @transform_0, window_bounds = array<i64: 64, 32>}, {pipeline_mode = #tpu.pipeline_mode<synchronous>, transform_indices = @transform_1, window_bounds = array<i64: 32, 128>}, {pipeline_mode = #tpu.pipeline_mode<synchronous>, transform_indices = @transform_2, window_bounds = array<i64: 1, 128>}, {transform_indices = @transform_3, window_bounds = array<i64: 64, 128>}]} {
    %c0 = arith.constant 0 : index
    %c0_0 = arith.constant 0 : index
    %0 = vector.load %arg1[%c0, %c0_0] : memref<64x32xbf16, #tpu.memory_space<vmem>>, vector<64x32xbf16>
    %c0_1 = arith.constant 0 : index
    %c0_2 = arith.constant 0 : index
    %1 = vector.load %arg2[%c0_1, %c0_2] : memref<32x128xbf16, #tpu.memory_space<vmem>>, vector<32x128xbf16>
    %cst = arith.constant dense<0.000000e+00> : vector<64x128xf32>
    %2 = tpu.matmul %0, %1, %cst {dimension_numbers = #tpu.dot_dimension_numbers<[1], [0], [0], [1], [0, 0, 1, 1], [], []>} : vector<64x32xbf16>, vector<32x128xbf16>, vector<64x128xf32> -> vector<64x128xf32>
    %c0_3 = arith.constant 0 : index
    %c0_4 = arith.constant 0 : index
    %3 = vector.load %arg3[%c0_3, %c0_4] : memref<1x128xf32, #tpu.memory_space<vmem>>, vector<1x128xf32>
    %4 = vector.broadcast %3 : vector<1x128xf32> to vector<64x128xf32>
    %5 = arith.addf %2, %4 : vector<64x128xf32>
    %cst_5 = arith.constant 0.000000e+00 : f32
    %6 = vector.broadcast %cst_5 : f32 to vector<64x128xf32>
    %7 = arith.maximumf %5, %6 : vector<64x128xf32>
    %c0_6 = arith.constant 0 : index
    %c0_7 = arith.constant 0 : index
    %8 = vector.load %arg4[%c0_6, %c0_7] : memref<64x128xf32, #tpu.memory_space<vmem>>, vector<64x128xf32>
    tpu.vector_store %arg4[%c0_6, %c0_7], %7 {strides = array<i32>} : memref<64x128xf32, #tpu.memory_space<vmem>>, vector<64x128xf32>,
    return
  }
  func.func @transform_0(%arg0: i32) -> (i32, i32) {
    %c0_i32 = arith.constant 0 : i32
    %c0_i32_0 = arith.constant 0 : i32
    return %arg0, %c0_i32 : i32, i32
  }
  func.func @transform_1(%arg0: i32) -> (i32, i32) {
    %c0_i32 = arith.constant 0 : i32
    %c0_i32_0 = arith.constant 0 : i32
    %c0_i32_1 = arith.constant 0 : i32
    return %c0_i32, %c0_i32_0 : i32, i32
  }
  func.func @transform_2(%arg0: i32) -> (i32, i32) {
    %c0_i32 = arith.constant 0 : i32
    %c0_i32_0 = arith.constant 0 : i32
    %c0_i32_1 = arith.constant 0 : i32
    return %c0_i32, %c0_i32_0 : i32, i32
  }
  func.func @transform_3(%arg0: i32) -> (i32, i32) {
    %c0_i32 = arith.constant 0 : i32
    %c0_i32_0 = arith.constant 0 : i32
    return %arg0, %c0_i32 : i32, i32
  }
}

module attributes {stable_mosaic.version = 11 : i64} {
  func.func @_mlp_kernel(%arg0: memref<2x256xbf16, #tpu.memory_space<vmem>>, %arg1: memref<256x128xbf16, #tpu.memory_space<vmem>>, %arg2: memref<1x128xf32, #tpu.memory_space<vmem>>, %arg3: memref<1x128xf32, #tpu.memory_space<vmem>>, %arg4: memref<1x128xf32, #tpu.memory_space<vmem>>, %arg5: memref<128x128xbf16, #tpu.memory_space<vmem>>, %arg6: memref<1x128xf32, #tpu.memory_space<vmem>>, %arg7: memref<2x128xf32, #tpu.memory_space<vmem>>) attributes {dimension_semantics = [], scalar_prefetch = 0 : i64, scratch_operands = 0 : i64, tpu.core_type = #tpu.core_type<tc>} {
    %c0 = arith.constant 0 : index
    %c0_0 = arith.constant 0 : index
    %0 = vector.load %arg0[%c0, %c0_0] : memref<2x256xbf16, #tpu.memory_space<vmem>>, vector<2x256xbf16>
    %c0_1 = arith.constant 0 : index
    %c0_2 = arith.constant 0 : index
    %1 = vector.load %arg1[%c0_1, %c0_2] : memref<256x128xbf16, #tpu.memory_space<vmem>>, vector<256x128xbf16>
    %cst = arith.constant dense<0.000000e+00> : vector<2x128xf32>
    %2 = tpu.matmul %0, %1, %cst {dimension_numbers = #tpu.dot_dimension_numbers<[1], [0], [0], [1], [0, 0, 1, 1], [], []>} : vector<2x256xbf16>, vector<256x128xbf16>, vector<2x128xf32> -> vector<2x128xf32>
    %c0_3 = arith.constant 0 : index
    %c0_4 = arith.constant 0 : index
    %3 = vector.load %arg2[%c0_3, %c0_4] : memref<1x128xf32, #tpu.memory_space<vmem>>, vector<1x128xf32>
    %4 = vector.broadcast %3 : vector<1x128xf32> to vector<2x128xf32>
    %5 = arith.addf %2, %4 : vector<2x128xf32>
    %cst_5 = arith.constant dense<0.000000e+00> : vector<128xf32>
    %6 = vector.multi_reduction <add>, %5, %cst_5 [0] : vector<2x128xf32> to vector<128xf32>
    %7 = vector.shape_cast %6 : vector<128xf32> to vector<1x128xf32>
    %cst_6 = arith.constant 2.000000e+00 : f32
    %8 = vector.broadcast %cst_6 : f32 to vector<1x128xf32>
    %9 = arith.divf %7, %8 : vector<1x128xf32>
    %10 = vector.broadcast %9 : vector<1x128xf32> to vector<2x128xf32>
    %11 = arith.subf %5, %10 : vector<2x128xf32>
    %12 = vector.broadcast %9 : vector<1x128xf32> to vector<2x128xf32>
    %13 = arith.subf %5, %12 : vector<2x128xf32>
    %14 = arith.mulf %11, %13 : vector<2x128xf32>
    %cst_7 = arith.constant dense<0.000000e+00> : vector<128xf32>
    %15 = vector.multi_reduction <add>, %14, %cst_7 [0] : vector<2x128xf32> to vector<128xf32>
    %16 = vector.shape_cast %15 : vector<128xf32> to vector<1x128xf32>
    %cst_8 = arith.constant 2.000000e+00 : f32
    %17 = vector.broadcast %cst_8 : f32 to vector<1x128xf32>
    %18 = arith.divf %16, %17 : vector<1x128xf32>
    %19 = vector.broadcast %9 : vector<1x128xf32> to vector<2x128xf32>
    %20 = arith.subf %5, %19 : vector<2x128xf32>
    %cst_9 = arith.constant 9.99999974E-6 : f32
    %21 = vector.broadcast %cst_9 : f32 to vector<1x128xf32>
    %22 = arith.addf %18, %21 : vector<1x128xf32>
    %23 = math.rsqrt %22 : vector<1x128xf32>
    %24 = vector.broadcast %23 : vector<1x128xf32> to vector<2x128xf32>
    %25 = arith.mulf %20, %24 : vector<2x128xf32>
    %c0_10 = arith.constant 0 : index
    %c0_11 = arith.constant 0 : index
    %26 = vector.load %arg3[%c0_10, %c0_11] : memref<1x128xf32, #tpu.memory_space<vmem>>, vector<1x128xf32>
    %27 = vector.broadcast %26 : vector<1x128xf32> to vector<2x128xf32>
    %28 = arith.mulf %25, %27 : vector<2x128xf32>
    %c0_12 = arith.constant 0 : index
    %c0_13 = arith.constant 0 : index
    %29 = vector.load %arg4[%c0_12, %c0_13] : memref<1x128xf32, #tpu.memory_space<vmem>>, vector<1x128xf32>
    %30 = vector.broadcast %29 : vector<1x128xf32> to vector<2x128xf32>
    %31 = arith.addf %28, %30 : vector<2x128xf32>
    %cst_14 = arith.constant 0.000000e+00 : f32
    %32 = vector.broadcast %cst_14 : f32 to vector<2x128xf32>
    %33 = arith.maximumf %31, %32 : vector<2x128xf32>
    %34 = arith.truncf %33 : vector<2x128xf32> to vector<2x128xbf16>
    %c0_15 = arith.constant 0 : index
    %c0_16 = arith.constant 0 : index
    %35 = vector.load %arg5[%c0_15, %c0_16] : memref<128x128xbf16, #tpu.memory_space<vmem>>, vector<128x128xbf16>
    %cst_17 = arith.constant dense<0.000000e+00> : vector<2x128xf32>
    %36 = tpu.matmul %34, %35, %cst_17 {dimension_numbers = #tpu.dot_dimension_numbers<[1], [0], [0], [1], [0, 0, 1, 1], [], []>} : vector<2x128xbf16>, vector<128x128xbf16>, vector<2x128xf32> -> vector<2x128xf32>
    %c0_18 = arith.constant 0 : index
    %c0_19 = arith.constant 0 : index
    %37 = vector.load %arg6[%c0_18, %c0_19] : memref<1x128xf32, #tpu.memory_space<vmem>>, vector<1x128xf32>
    %38 = vector.broadcast %37 : vector<1x128xf32> to vector<2x128xf32>
    %39 = arith.addf %36, %38 : vector<2x128xf32>
    %c0_20 = arith.constant 0 : index
    %c0_21 = arith.constant 0 : index
    %40 = vector.load %arg7[%c0_20, %c0_21] : memref<2x128xf32, #tpu.memory_space<vmem>>, vector<2x128xf32>
    tpu.vector_store %arg7[%c0_20, %c0_21], %39 {strides = array<i32>} : memref<2x128xf32, #tpu.memory_space<vmem>>, vector<2x128xf32>,
    return
  }
}

module attributes {stable_mosaic.version = 11 : i64} {
  func.func @_mlp_kernel(%arg0: memref<2x16xbf16, #tpu.memory_space<vmem>>, %arg1: memref<16x128xbf16, #tpu.memory_space<vmem>>, %arg2: memref<1x128xf32, #tpu.memory_space<vmem>>, %arg3: memref<1x128xf32, #tpu.memory_space<vmem>>, %arg4: memref<1x128xf32, #tpu.memory_space<vmem>>, %arg5: memref<128x128xbf16, #tpu.memory_space<vmem>>, %arg6: memref<1x128xf32, #tpu.memory_space<vmem>>, %arg7: memref<2x128xf32, #tpu.memory_space<vmem>>) attributes {dimension_semantics = [], scalar_prefetch = 0 : i64, scratch_operands = 0 : i64, tpu.core_type = #tpu.core_type<tc>} {
    %c0 = arith.constant 0 : index
    %c0_0 = arith.constant 0 : index
    %0 = vector.load %arg0[%c0, %c0_0] : memref<2x16xbf16, #tpu.memory_space<vmem>>, vector<2x16xbf16>
    %c0_1 = arith.constant 0 : index
    %c0_2 = arith.constant 0 : index
    %1 = vector.load %arg1[%c0_1, %c0_2] : memref<16x128xbf16, #tpu.memory_space<vmem>>, vector<16x128xbf16>
    %cst = arith.constant dense<0.000000e+00> : vector<2x128xf32>
    %2 = tpu.matmul %0, %1, %cst {dimension_numbers = #tpu.dot_dimension_numbers<[1], [0], [0], [1], [0, 0, 1, 1], [], []>} : vector<2x16xbf16>, vector<16x128xbf16>, vector<2x128xf32> -> vector<2x128xf32>
    %c0_3 = arith.constant 0 : index
    %c0_4 = arith.constant 0 : index
    %3 = vector.load %arg2[%c0_3, %c0_4] : memref<1x128xf32, #tpu.memory_space<vmem>>, vector<1x128xf32>
    %4 = vector.broadcast %3 : vector<1x128xf32> to vector<2x128xf32>
    %5 = arith.addf %2, %4 : vector<2x128xf32>
    %cst_5 = arith.constant dense<0.000000e+00> : vector<128xf32>
    %6 = vector.multi_reduction <add>, %5, %cst_5 [0] : vector<2x128xf32> to vector<128xf32>
    %7 = vector.shape_cast %6 : vector<128xf32> to vector<1x128xf32>
    %cst_6 = arith.constant 2.000000e+00 : f32
    %8 = vector.broadcast %cst_6 : f32 to vector<1x128xf32>
    %9 = arith.divf %7, %8 : vector<1x128xf32>
    %10 = vector.broadcast %9 : vector<1x128xf32> to vector<2x128xf32>
    %11 = arith.subf %5, %10 : vector<2x128xf32>
    %12 = vector.broadcast %9 : vector<1x128xf32> to vector<2x128xf32>
    %13 = arith.subf %5, %12 : vector<2x128xf32>
    %14 = arith.mulf %11, %13 : vector<2x128xf32>
    %cst_7 = arith.constant dense<0.000000e+00> : vector<128xf32>
    %15 = vector.multi_reduction <add>, %14, %cst_7 [0] : vector<2x128xf32> to vector<128xf32>
    %16 = vector.shape_cast %15 : vector<128xf32> to vector<1x128xf32>
    %cst_8 = arith.constant 2.000000e+00 : f32
    %17 = vector.broadcast %cst_8 : f32 to vector<1x128xf32>
    %18 = arith.divf %16, %17 : vector<1x128xf32>
    %19 = vector.broadcast %9 : vector<1x128xf32> to vector<2x128xf32>
    %20 = arith.subf %5, %19 : vector<2x128xf32>
    %cst_9 = arith.constant 9.99999974E-6 : f32
    %21 = vector.broadcast %cst_9 : f32 to vector<1x128xf32>
    %22 = arith.addf %18, %21 : vector<1x128xf32>
    %23 = math.rsqrt %22 : vector<1x128xf32>
    %24 = vector.broadcast %23 : vector<1x128xf32> to vector<2x128xf32>
    %25 = arith.mulf %20, %24 : vector<2x128xf32>
    %c0_10 = arith.constant 0 : index
    %c0_11 = arith.constant 0 : index
    %26 = vector.load %arg3[%c0_10, %c0_11] : memref<1x128xf32, #tpu.memory_space<vmem>>, vector<1x128xf32>
    %27 = vector.broadcast %26 : vector<1x128xf32> to vector<2x128xf32>
    %28 = arith.mulf %25, %27 : vector<2x128xf32>
    %c0_12 = arith.constant 0 : index
    %c0_13 = arith.constant 0 : index
    %29 = vector.load %arg4[%c0_12, %c0_13] : memref<1x128xf32, #tpu.memory_space<vmem>>, vector<1x128xf32>
    %30 = vector.broadcast %29 : vector<1x128xf32> to vector<2x128xf32>
    %31 = arith.addf %28, %30 : vector<2x128xf32>
    %cst_14 = arith.constant 0.000000e+00 : f32
    %32 = vector.broadcast %cst_14 : f32 to vector<2x128xf32>
    %33 = arith.maximumf %31, %32 : vector<2x128xf32>
    %34 = arith.truncf %33 : vector<2x128xf32> to vector<2x128xbf16>
    %c0_15 = arith.constant 0 : index
    %c0_16 = arith.constant 0 : index
    %35 = vector.load %arg5[%c0_15, %c0_16] : memref<128x128xbf16, #tpu.memory_space<vmem>>, vector<128x128xbf16>
    %cst_17 = arith.constant dense<0.000000e+00> : vector<2x128xf32>
    %36 = tpu.matmul %34, %35, %cst_17 {dimension_numbers = #tpu.dot_dimension_numbers<[1], [0], [0], [1], [0, 0, 1, 1], [], []>} : vector<2x128xbf16>, vector<128x128xbf16>, vector<2x128xf32> -> vector<2x128xf32>
    %c0_18 = arith.constant 0 : index
    %c0_19 = arith.constant 0 : index
    %37 = vector.load %arg6[%c0_18, %c0_19] : memref<1x128xf32, #tpu.memory_space<vmem>>, vector<1x128xf32>
    %38 = vector.broadcast %37 : vector<1x128xf32> to vector<2x128xf32>
    %39 = arith.addf %36, %38 : vector<2x128xf32>
    %c0_20 = arith.constant 0 : index
    %c0_21 = arith.constant 0 : index
    %40 = vector.load %arg7[%c0_20, %c0_21] : memref<2x128xf32, #tpu.memory_space<vmem>>, vector<2x128xf32>
    tpu.vector_store %arg7[%c0_20, %c0_21], %39 {strides = array<i32>} : memref<2x128xf32, #tpu.memory_space<vmem>>, vector<2x128xf32>,
    return
  }
}

module attributes {stable_mosaic.version = 11 : i64} {
  func.func @_byol_loss_kernel(%arg0: memref<2x16xf32, #tpu.memory_space<vmem>>, %arg1: memref<2x16xf32, #tpu.memory_space<vmem>>, %arg2: memref<2x1xf32, #tpu.memory_space<vmem>>) attributes {dimension_semantics = [], scalar_prefetch = 0 : i64, scratch_operands = 0 : i64, tpu.core_type = #tpu.core_type<tc>} {
    %c0 = arith.constant 0 : index
    %c0_0 = arith.constant 0 : index
    %0 = vector.load %arg0[%c0, %c0_0] : memref<2x16xf32, #tpu.memory_space<vmem>>, vector<2x16xf32>
    %c0_1 = arith.constant 0 : index
    %c0_2 = arith.constant 0 : index
    %1 = vector.load %arg1[%c0_1, %c0_2] : memref<2x16xf32, #tpu.memory_space<vmem>>, vector<2x16xf32>
    %2 = arith.mulf %0, %0 : vector<2x16xf32>
    %cst = arith.constant dense<0.000000e+00> : vector<2xf32>
    %3 = vector.multi_reduction <add>, %2, %cst [1] : vector<2x16xf32> to vector<2xf32>
    %4 = vector.shape_cast %3 : vector<2xf32> to vector<2x1xf32>
    %cst_3 = arith.constant 9.99999996E-13 : f32
    %5 = vector.broadcast %cst_3 : f32 to vector<2x1xf32>
    %6 = arith.addf %4, %5 : vector<2x1xf32>
    %7 = math.rsqrt %6 : vector<2x1xf32>
    %8 = arith.mulf %1, %1 : vector<2x16xf32>
    %cst_4 = arith.constant dense<0.000000e+00> : vector<2xf32>
    %9 = vector.multi_reduction <add>, %8, %cst_4 [1] : vector<2x16xf32> to vector<2xf32>
    %10 = vector.shape_cast %9 : vector<2xf32> to vector<2x1xf32>
    %cst_5 = arith.constant 9.99999996E-13 : f32
    %11 = vector.broadcast %cst_5 : f32 to vector<2x1xf32>
    %12 = arith.addf %10, %11 : vector<2x1xf32>
    %13 = math.rsqrt %12 : vector<2x1xf32>
    %14 = arith.mulf %0, %1 : vector<2x16xf32>
    %cst_6 = arith.constant dense<0.000000e+00> : vector<2xf32>
    %15 = vector.multi_reduction <add>, %14, %cst_6 [1] : vector<2x16xf32> to vector<2xf32>
    %16 = vector.shape_cast %15 : vector<2xf32> to vector<2x1xf32>
    %cst_7 = arith.constant 2.000000e+00 : f32
    %17 = vector.broadcast %cst_7 : f32 to vector<2x1xf32>
    %18 = arith.mulf %17, %16 : vector<2x1xf32>
    %19 = arith.mulf %18, %7 : vector<2x1xf32>
    %20 = arith.mulf %19, %13 : vector<2x1xf32>
    %cst_8 = arith.constant 2.000000e+00 : f32
    %21 = vector.broadcast %cst_8 : f32 to vector<2x1xf32>
    %22 = arith.subf %21, %20 : vector<2x1xf32>
    %c0_9 = arith.constant 0 : index
    %c0_10 = arith.constant 0 : index
    %23 = vector.load %arg2[%c0_9, %c0_10] : memref<2x1xf32, #tpu.memory_space<vmem>>, vector<2x1xf32>
    tpu.vector_store %arg2[%c0_9, %c0_10], %22 {strides = array<i32>} : memref<2x1xf32, #tpu.memory_space<vmem>>, vector<2x1xf32>,
    return
  }
}

</mosaic_0001>

<bundles_post_ra>
// kernel: wave_byol_forward.9
= control target key start
LH: loop header
LB: loop body
LE: loop exit
PB: predicated region body
PF: predicated region fallthrough
CT: control target
= control target key end

     0   :  { %vm63_vm0 = vcmask 261120   ;;  %s231_s1 = inlined_call_operand.vmem [shape: bf16[32,128], index: 1, kind: input, shape index: {}]   ;;  %s232_s2 = inlined_call_operand.vmem [shape: f32[1,128], index: 2, kind: input, shape index: {}]   ;;  %s233_s0 = inlined_call_operand.vmem [shape: bf16[64,32], index: 0, kind: input, shape index: {}]   ;;  %s234_s3 = inlined_call_operand.vmem [shape: f32[64,128], index: 3, kind: output, shape index: {}]  }
   0x1   :  { %v158_v0 = vld [vmem:[%s231_s1 + $0x8] sm:$0xff]  ;;  %v157_v1 = vld [vmem:[%s231_s1] sm:$0xff]  ;;  %v155_v4 = vld [vmem:[%s233_s0 + $0x10] sm:$0xff] }
   0x2   :  { %82 = vmatpush.bf16.msra.mxu0 %v158_v0  ;;  %159 = vmatpush.bf16.msra.mxu1 %v158_v0  ;;  %v153_v2 = vld [vmem:[%s233_s0] sm:$0xff]  ;;  %v154_v3 = vld [vmem:[%s233_s0 + $0x8] sm:$0xff]  ;;  %v156_v5 = vld [vmem:[%s233_s0 + $0x18] sm:$0xff] }
   0x3   :  { %160 = vmatpush.bf16.msra.mxu2 %v158_v0  ;;  %161 = vmatpush.bf16.msra.mxu3 %v158_v0  ;;  %v165_v6 = vld [vmem:[%s232_s2] ss:$0 sm:$0xff] }
   0x6   :  { %83 = vmatpush.bf16.msra.mxu0 %v157_v1  ;;  %162 = vmatpush.bf16.msra.mxu1 %v157_v1 }
   0x7   :  { %163 = vmatpush.bf16.msra.mxu2 %v157_v1  ;;  %164 = vmatpush.bf16.msra.mxu3 %v157_v1 }
   0x9   :  { %149 = vmatmul.msk.bf16.vlgmr.msra.gmra.mxu0 %vm63_vm0, %v153_v2  ;;  %150 = vmatmul.msk.bf16.vlgmr.msra.gmra.mxu1 %vm63_vm0, %v154_v3 }
   0xa   :  { %151 = vmatmul.msk.bf16.vlgmr.msra.gmra.mxu2 %vm63_vm0, %v155_v4  ;;  %152 = vmatmul.msk.bf16.vlgmr.msra.gmra.mxu3 %vm63_vm0, %v156_v5 }
  0x86   :  { %v85_v7 = vpop.f32.mrf.mxu0  ;;  %v90_v8 = vpop.f32.mrf.mxu1 }
  0x87   :  { %v86_v9 = vadd.f32 %v165_v6, %v85_v7  ;;  %v91_v10 = vadd.f32 %v165_v6, %v90_v8 }
  0x89   :  { %v105_v11 = vmax.f32 %v86_v9, 0.0  ;;  %v107_v12 = vmax.f32 %v91_v10, 0.0 }
  0x8b   :  { %113 = vst [vmem:[%s234_s3] sm:$0xff] %v105_v11 }
  0x8c   :  { %115 = vst [vmem:[%s234_s3 + $0x10] sm:$0xff] %v107_v12 }
  0x8d   :  { %v95_v13 = vpop.f32.mrf.mxu2  ;;  %v100_v14 = vpop.f32.mrf.mxu3 }
  0x8e   :  { %v96_v15 = vadd.f32 %v165_v6, %v95_v13  ;;  %v101_v16 = vadd.f32 %v165_v6, %v100_v14  ;;  %v87_v17 = vpop.f32.mrf.mxu0  ;;  %v92_v18 = vpop.f32.mrf.mxu1 }
  0x8f   :  { %v88_v19 = vadd.f32 %v165_v6, %v87_v17  ;;  %v93_v20 = vadd.f32 %v165_v6, %v92_v18 }
  0x90   :  { %v109_v21 = vmax.f32 %v96_v15, 0.0  ;;  %v111_v22 = vmax.f32 %v101_v16, 0.0 }
  0x91   :  { %v106_v23 = vmax.f32 %v88_v19, 0.0  ;;  %v108_v24 = vmax.f32 %v93_v20, 0.0 }
  0x92   :  { %117 = vst [vmem:[%s234_s3 + $0x20] sm:$0xff] %v109_v21 }
  0x93   :  { %119 = vst [vmem:[%s234_s3 + $0x30] sm:$0xff] %v111_v22 }
  0x94   :  { %114 = vst [vmem:[%s234_s3 + $0x8] sm:$0xff] %v106_v23 }
  0x95   :  { %116 = vst [vmem:[%s234_s3 + $0x18] sm:$0xff] %v108_v24  ;;  %v97_v25 = vpop.f32.mrf.mxu2  ;;  %v102_v26 = vpop.f32.mrf.mxu3 }
  0x96   :  { %v98_v27 = vadd.f32 %v165_v6, %v97_v25  ;;  %v103_v28 = vadd.f32 %v165_v6, %v102_v26 }
  0x98   :  { %v110_v29 = vmax.f32 %v98_v27, 0.0  ;;  %v112_v30 = vmax.f32 %v103_v28, 0.0 }
  0x9a   :  { %118 = vst [vmem:[%s234_s3 + $0x28] sm:$0xff] %v110_v29 }
  0x9b   :  { %120 = vst [vmem:[%s234_s3 + $0x38] sm:$0xff] %v112_v30 }

// kernel: wave_byol_forward.8
= control target key start
LH: loop header
LB: loop body
LE: loop exit
PB: predicated region body
PF: predicated region fallthrough
CT: control target
= control target key end

     0   :  { %vm101_vm0 = vcmask 1041408   ;;  %vm76_vm1 = vcmask 31744   ;;  %s348_s1 = inlined_call_operand.vmem [shape: bf16[4,128], index: 1, kind: input, shape index: {}]   ;;  %s349_s0 = inlined_call_operand.vmem [shape: bf16[128,4], index: 0, kind: input, shape index: {}]   ;;  %s350_s2 = inlined_call_operand.vmem [shape: f32[1,128], index: 2, kind: input, shape index: {}]   ;;  %s351_s3 = inlined_call_operand.vmem [shape: f32[128,128], index: 3, kind: output, shape index: {}]  }
   0x1   :  { %v31_v0 = vld [vmem:[%s348_s1] sm:$0x3]  ;;  %v232_v3 = vld [vmem:[%s349_s0 + $0x10] sm:$0xff]  ;;  %v231_v6 = vld [vmem:[%s349_s0 + $0x8] sm:$0xff] }
   0x2   :  { %v103_v1 = vsel %vm101_vm0, %v31_v0, 0  ;;  %v230_v2 = vld [vmem:[%s349_s0] sm:$0xff]  ;;  %v236_v5 = vld [vmem:[%s349_s0 + $0x30] sm:$0xff]  ;;  %v233_v7 = vld [vmem:[%s349_s0 + $0x18] sm:$0xff] }
   0x3   :  { %112 = vmatpush.bf16.msra.mxu0 %v103_v1  ;;  %238 = vmatpush.bf16.msra.mxu1 %v103_v1  ;;  %v234_v4 = vld [vmem:[%s349_s0 + $0x20] sm:$0xff]  ;;  %v235_v8 = vld [vmem:[%s349_s0 + $0x28] sm:$0xff]  ;;  %v237_v9 = vld [vmem:[%s349_s0 + $0x38] sm:$0xff] }
   0x4   :  { %239 = vmatpush.bf16.msra.mxu2 %v103_v1  ;;  %240 = vmatpush.bf16.msra.mxu3 %v103_v1  ;;  %v241_v10 = vld [vmem:[%s350_s2] ss:$0 sm:$0xff] }
   0x6   :  { %222 = vmatmul.msk.bf16.vlgmr.msra.gmra.mxu0 %vm76_vm1, %v230_v2  ;;  %224 = vmatmul.msk.bf16.vlgmr.msra.gmra.mxu1 %vm76_vm1, %v232_v3 }
   0x7   :  { %226 = vmatmul.msk.bf16.vlgmr.msra.gmra.mxu2 %vm76_vm1, %v234_v4  ;;  %228 = vmatmul.msk.bf16.vlgmr.msra.gmra.mxu3 %vm76_vm1, %v236_v5 }
  0x16   :  { %223 = vmatmul.msk.bf16.gmra.mxu0 %vm76_vm1, %v231_v6  ;;  %225 = vmatmul.msk.bf16.gmra.mxu1 %vm76_vm1, %v233_v7 }
  0x17   :  { %227 = vmatmul.msk.bf16.gmra.mxu2 %vm76_vm1, %v235_v8  ;;  %229 = vmatmul.msk.bf16.gmra.mxu3 %vm76_vm1, %v237_v9 }
  0x83   :  { %v114_v11 = vpop.f32.mrf.mxu0  ;;  %v124_v12 = vpop.f32.mrf.mxu1 }
  0x84   :  { %v115_v13 = vadd.f32 %v241_v10, %v114_v11  ;;  %v125_v14 = vadd.f32 %v241_v10, %v124_v12 }
  0x86   :  { %v154_v15 = vmax.f32 %v115_v13, 0.0  ;;  %v158_v16 = vmax.f32 %v125_v14, 0.0 }
  0x88   :  { %170 = vst [vmem:[%s351_s3] sm:$0xff] %v154_v15 }
  0x89   :  { %174 = vst [vmem:[%s351_s3 + $0x20] sm:$0xff] %v158_v16 }
  0x8a   :  { %v134_v17 = vpop.f32.mrf.mxu2  ;;  %v144_v18 = vpop.f32.mrf.mxu3 }
  0x8b   :  { %v135_v19 = vadd.f32 %v241_v10, %v134_v17  ;;  %v145_v20 = vadd.f32 %v241_v10, %v144_v18  ;;  %v116_v21 = vpop.f32.mrf.mxu0  ;;  %v126_v22 = vpop.f32.mrf.mxu1 }
  0x8c   :  { %v117_v23 = vadd.f32 %v241_v10, %v116_v21  ;;  %v127_v24 = vadd.f32 %v241_v10, %v126_v22 }
  0x8d   :  { %v162_v25 = vmax.f32 %v135_v19, 0.0  ;;  %v166_v26 = vmax.f32 %v145_v20, 0.0 }
  0x8e   :  { %v155_v27 = vmax.f32 %v117_v23, 0.0  ;;  %v159_v28 = vmax.f32 %v127_v24, 0.0 }
  0x8f   :  { %178 = vst [vmem:[%s351_s3 + $0x40] sm:$0xff] %v162_v25 }
  0x90   :  { %182 = vst [vmem:[%s351_s3 + $0x60] sm:$0xff] %v166_v26 }
  0x91   :  { %171 = vst [vmem:[%s351_s3 + $0x8] sm:$0xff] %v155_v27 }
  0x92   :  { %175 = vst [vmem:[%s351_s3 + $0x28] sm:$0xff] %v159_v28  ;;  %v136_v29 = vpop.f32.mrf.mxu2  ;;  %v146_v30 = vpop.f32.mrf.mxu3 }
  0x93   :  { %v137_v31 = vadd.f32 %v241_v10, %v136_v29  ;;  %v147_v32 = vadd.f32 %v241_v10, %v146_v30  ;;  %v119_v33 = vpop.f32.mrf.mxu0  ;;  %v129_v34 = vpop.f32.mrf.mxu1 }
  0x94   :  { %v120_v35 = vadd.f32 %v241_v10, %v119_v33  ;;  %v130_v36 = vadd.f32 %v241_v10, %v129_v34 }
  0x95   :  { %v163_v37 = vmax.f32 %v137_v31, 0.0  ;;  %v167_v38 = vmax.f32 %v147_v32, 0.0 }
  0x96   :  { %v156_v39 = vmax.f32 %v120_v35, 0.0  ;;  %v160_v40 = vmax.f32 %v130_v36, 0.0 }
  0x97   :  { %179 = vst [vmem:[%s351_s3 + $0x48] sm:$0xff] %v163_v37 }
  0x98   :  { %183 = vst [vmem:[%s351_s3 + $0x68] sm:$0xff] %v167_v38 }
  0x99   :  { %172 = vst [vmem:[%s351_s3 + $0x10] sm:$0xff] %v156_v39 }
  0x9a   :  { %176 = vst [vmem:[%s351_s3 + $0x30] sm:$0xff] %v160_v40  ;;  %v139_v41 = vpop.f32.mrf.mxu2  ;;  %v149_v42 = vpop.f32.mrf.mxu3 }
  0x9b   :  { %v140_v43 = vadd.f32 %v241_v10, %v139_v41  ;;  %v150_v44 = vadd.f32 %v241_v10, %v149_v42  ;;  %v121_v45 = vpop.f32.mrf.mxu0  ;;  %v131_v46 = vpop.f32.mrf.mxu1 }
  0x9c   :  { %v122_v47 = vadd.f32 %v241_v10, %v121_v45  ;;  %v132_v48 = vadd.f32 %v241_v10, %v131_v46 }
  0x9d   :  { %v164_v49 = vmax.f32 %v140_v43, 0.0  ;;  %v168_v50 = vmax.f32 %v150_v44, 0.0 }
  0x9e   :  { %v157_v51 = vmax.f32 %v122_v47, 0.0  ;;  %v161_v52 = vmax.f32 %v132_v48, 0.0 }
  0x9f   :  { %180 = vst [vmem:[%s351_s3 + $0x50] sm:$0xff] %v164_v49 }
  0xa0   :  { %184 = vst [vmem:[%s351_s3 + $0x70] sm:$0xff] %v168_v50 }
  0xa1   :  { %173 = vst [vmem:[%s351_s3 + $0x18] sm:$0xff] %v157_v51 }
  0xa2   :  { %177 = vst [vmem:[%s351_s3 + $0x38] sm:$0xff] %v161_v52  ;;  %v141_v53 = vpop.f32.mrf.mxu2  ;;  %v151_v54 = vpop.f32.mrf.mxu3 }
  0xa3   :  { %v142_v55 = vadd.f32 %v241_v10, %v141_v53  ;;  %v152_v56 = vadd.f32 %v241_v10, %v151_v54 }
  0xa5   :  { %v165_v57 = vmax.f32 %v142_v55, 0.0  ;;  %v169_v58 = vmax.f32 %v152_v56, 0.0 }
  0xa7   :  { %181 = vst [vmem:[%s351_s3 + $0x58] sm:$0xff] %v165_v57 }
  0xa8   :  { %185 = vst [vmem:[%s351_s3 + $0x78] sm:$0xff] %v169_v58 }

// kernel: wave_byol_forward.15
= control target key start
LH: loop header
LB: loop body
LE: loop exit
PB: predicated region body
PF: predicated region fallthrough
CT: control target
= control target key end

     0   :  { %vm14_vm0 = vcmask 123904   ;;  %vm52_vm7 = vcmask 1024   ;;  %s86_s0 = inlined_call_operand.vmem [shape: f32[2,16], index: 0, kind: input, shape index: {}]   ;;  %s87_s1 = inlined_call_operand.vmem [shape: f32[2,16], index: 1, kind: input, shape index: {}]   ;;  %s88_s2 = inlined_call_operand.vmem [shape: f32[2,1], index: 2, kind: output, shape index: {}]  }
   0x1   :  { %v11_v0 = vld [vmem:[%s86_s0] sm:$0x3] }
   0x2   :  { %v12_v1 = vld [vmem:[%s87_s1] sm:$0x3]  ;;  %v13_v2 = vmul.f32 %v11_v0, %v11_v0 }
   0x3   :  { %v44_v3 = vmul.f32 %v12_v1, %v11_v0  ;;  %v29_v6 = vmul.f32 %v12_v1, %v12_v1 }
   0x4   :  { %v15_v4 = vsel %vm14_vm0, %v13_v2, 0.0 }
   0x5   :  { %v45_v5 = vsel %vm14_vm0, %v44_v3, 0.0  ;;  %16 = vadd.xlane.f32.xlu0 %v15_v4  ;;  %v30_v7 = vsel %vm14_vm0, %v29_v6, 0.0 }
   0x6   :  { %46 = vadd.xlane.f32.xlu1 %v45_v5 }
   0xd   :  { %31 = vadd.xlane.f32.xlu0 %v30_v7 }
  0x78   :  { %v17_v8 = vpop.xlane.xlu0 %16 }
  0x79   :  { %v18_v9 = vadd.f32 1e-12, %v17_v8  ;;  %v47_v20 = vpop.xlane.xlu1 %46 }
  0x7a   :  { %v48_v23 = vmul.f32 2.0, %v47_v20 }
  0x7b   :  { %58 = vrsqrt.f32 %v18_v9  ;;  %vm25_vm2 = vweird.f32 %v18_v9 }
  0x80   :  { %v32_v10 = vpop.xlane.xlu0 %31 }
  0x81   :  { %v59_v11 = vpop.eup %58  ;;  %v33_v12 = vadd.f32 1e-12, %v32_v10 }
  0x82   :  { %v20_v13 = vmul.f32 %v59_v11, %v18_v9  ;;  %vm26_vm1 = vweird.f32 %v59_v11 }
  0x83   :  { %60 = vrsqrt.f32 %v33_v12  ;;  %vm27_vm3 = vmor %vm25_vm2, %vm26_vm1  ;;  %vm40_vm5 = vweird.f32 %v33_v12 }
  0x84   :  { %v21_v14 = vmul.f32 %v59_v11, %v20_v13 }
  0x86   :  { %v22_v15 = vmul.f32 0.5, %v21_v14 }
  0x88   :  { %v23_v16 = vsub.f32 1.5, %v22_v15 }
  0x89   :  { %v61_v17 = vpop.eup %60 }
  0x8a   :  { %v35_v18 = vmul.f32 %v61_v17, %v33_v12  ;;  %v24_v21 = vmul.f32 %v59_v11, %v23_v16  ;;  %vm41_vm4 = vweird.f32 %v61_v17 }
  0x8b   :  { %vm42_vm6 = vmor %vm40_vm5, %vm41_vm4 }
  0x8c   :  { %v36_v19 = vmul.f32 %v61_v17, %v35_v18  ;;  %v28_v25 = vsel %vm27_vm3, %v59_v11, %v24_v21 }
  0x8d   :  { %v49_v27 = vmul.f32 %v48_v23, %v28_v25 }
  0x8e   :  { %v37_v22 = vmul.f32 0.5, %v36_v19 }
  0x90   :  { %v38_v24 = vsub.f32 1.5, %v37_v22 }
  0x92   :  { %v39_v26 = vmul.f32 %v61_v17, %v38_v24 }
  0x94   :  { %v43_v28 = vsel %vm42_vm6, %v61_v17, %v39_v26 }
  0x95   :  { %v50_v29 = vmul.f32 %v49_v27, %v43_v28 }
  0x97   :  { %v51_v30 = vsub.f32 2.0, %v50_v29 }
  0x99   :  { %53 = vst.msk [vmem:[%s88_s2] sm:$0x3] %vm52_vm7, %v51_v30 }

// kernel: wave_byol_forward.11
= control target key start
LH: loop header
LB: loop body
LE: loop exit
PB: predicated region body
PF: predicated region fallthrough
CT: control target
= control target key end

     0   :  { %v456_v19 = vmov 2.0   ;;  %vm191_vm0 = vcmask 1041408   ;;  %s589_s1 = inlined_call_operand.vmem [shape: bf16[256,128], index: 1, kind: input, shape index: {}]   ;;  %s590_s0 = inlined_call_operand.vmem [shape: bf16[2,256], index: 0, kind: input, shape index: {}]   ;;  %s591_s2 = inlined_call_operand.vmem [shape: f32[1,128], index: 2, kind: input, shape index: {}]   ;;  %s592_s3 = inlined_call_operand.vmem [shape: f32[1,128], index: 3, kind: input, shape index: {}]   ;;  %s593_s4 = inlined_call_operand.vmem [shape: f32[1,128], index: 4, kind: input, shape index: {}]   ;;  %s594_s6 = inlined_call_operand.vmem [shape: f32[1,128], index: 6, kind: input, shape index: {}]   ;;  %s595_s5 = inlined_call_operand.vmem [shape: bf16[128,128], index: 5, kind: input, shape index: {}]   ;;  %s596_s7 = inlined_call_operand.vmem [shape: f32[2,128], index: 7, kind: output, shape index: {}]  }
   0x1   :  { %v430_v0 = vld [vmem:[%s589_s1 + $0x38] sm:$0xff]  ;;  %v429_v2 = vld [vmem:[%s589_s1 + $0x30] sm:$0xff]  ;;  %v26_v4 = vld [vmem:[%s590_s0] sm:$0x3]  ;;  %452 = vrcp.f32 %v456_v19 }
   0x2   :  { %v438_v1 = vld [vmem:[%s589_s1 + $0x78] sm:$0xff]  ;;  %165 = vmatpush.bf16.msra.mxu0 %v430_v0  ;;  %v437_v3 = vld [vmem:[%s589_s1 + $0x70] sm:$0xff]  ;;  %v428_v5 = vld [vmem:[%s589_s1 + $0x28] sm:$0xff]  ;;  %64 = vst [vmem:[#allocation1] ss:$9 sm:$0xff] %v26_v4 }
   0x3   :  { %178 = vmatpush.bf16.msra.mxu1 %v438_v1  ;;  %v436_v6 = vld [vmem:[%s589_s1 + $0x68] sm:$0xff]  ;;  %v427_v7 = vld [vmem:[%s589_s1 + $0x20] sm:$0xff]  ;;  %v426_v9 = vld [vmem:[%s589_s1 + $0x18] sm:$0xff] }
   0x4   :  { %v435_v8 = vld [vmem:[%s589_s1 + $0x60] sm:$0xff]  ;;  %v434_v10 = vld [vmem:[%s589_s1 + $0x58] sm:$0xff]  ;;  %v425_v11 = vld [vmem:[%s589_s1 + $0x10] sm:$0xff] }
   0x5   :  { %v433_v12 = vld [vmem:[%s589_s1 + $0x50] sm:$0xff]  ;;  %v424_v13 = vld [vmem:[%s589_s1 + $0x8] sm:$0xff]  ;;  %v423_v15 = vld [vmem:[%s589_s1] sm:$0xff] }
   0x6   :  { %166 = vmatpush.bf16.msra.mxu0 %v429_v2  ;;  %v432_v14 = vld [vmem:[%s589_s1 + $0x48] sm:$0xff]  ;;  %v431_v16 = vld [vmem:[%s589_s1 + $0x40] sm:$0xff]  ;;  %v446_v28 = vld [vmem:[%s595_s5 + $0x38] sm:$0xff] }
   0x7   :  { %179 = vmatpush.bf16.msra.mxu1 %v437_v3  ;;  %v453_v20 = vpop.eup %452  ;;  %v448_v21 = vld [vmem:[%s591_s2] ss:$0 sm:$0xff]  ;;  %309 = vmatpush.bf16.msra.mxu2 %v446_v28  ;;  %v445_v35 = vld [vmem:[%s595_s5 + $0x30] sm:$0xff]  ;;  %v444_v39 = vld [vmem:[%s595_s5 + $0x28] sm:$0xff] }
   0x8   :  { %v200_v22 = vmul.f32 2.0, %v453_v20  ;;  %vm204_vm1 = vweird.f32 %v453_v20  ;;  %v443_v43 = vld [vmem:[%s595_s5 + $0x20] sm:$0xff]  ;;  %v442_v46 = vld [vmem:[%s595_s5 + $0x18] sm:$0xff]  ;;  %v441_v49 = vld [vmem:[%s595_s5 + $0x10] sm:$0xff] }
   0x9   :  { %v65_v17 = vld [vmem:[#allocation1] sm:$0xff]  ;;  %v66_v18 = vld [vmem:[#allocation1 + $0x9] sm:$0xff] }
   0xa   :  { %167 = vmatpush.bf16.msra.mxu0 %v428_v5  ;;  %v201_v27 = vsub.f32 1.0, %v200_v22  ;;  %v440_v52 = vld [vmem:[%s595_s5 + $0x8] sm:$0xff]  ;;  %v439_v54 = vld [vmem:[%s595_s5] sm:$0xff] }
   0xb   :  { %180 = vmatpush.bf16.msra.mxu1 %v436_v6  ;;  %310 = vmatpush.bf16.msra.mxu2 %v445_v35  ;;  %v449_v2 = vld [vmem:[%s592_s3] ss:$0 sm:$0xff] }
   0xc   :  { %v202_v31 = vmul.f32 %v453_v20, %v201_v27  ;;  %v450_v5 = vld [vmem:[%s593_s4] ss:$0 sm:$0xff] }
   0xe   :  { %168 = vmatpush.bf16.msra.mxu0 %v427_v7  ;;  %v203_v37 = vadd.f32 %v453_v20, %v202_v31 }
   0xf   :  { %181 = vmatpush.bf16.msra.mxu1 %v435_v8  ;;  %311 = vmatpush.bf16.msra.mxu2 %v444_v39 }
  0x10   :  { %v205_v41 = vsel %vm204_vm1, %v453_v20, %v203_v37 }
  0x12   :  { %169 = vmatpush.bf16.msra.mxu0 %v426_v9 }
  0x13   :  { %182 = vmatpush.bf16.msra.mxu1 %v434_v10  ;;  %312 = vmatpush.bf16.msra.mxu2 %v443_v43  ;;  %v451_v10 = vld [vmem:[%s594_s6] ss:$0 sm:$0xff] }
  0x16   :  { %170 = vmatpush.bf16.msra.mxu0 %v425_v11 }
  0x17   :  { %183 = vmatpush.bf16.msra.mxu1 %v433_v12  ;;  %313 = vmatpush.bf16.msra.mxu2 %v442_v46 }
  0x1a   :  { %171 = vmatpush.bf16.msra.mxu0 %v424_v13 }
  0x1b   :  { %184 = vmatpush.bf16.msra.mxu1 %v432_v14  ;;  %314 = vmatpush.bf16.msra.mxu2 %v441_v49 }
  0x1e   :  { %172 = vmatpush.bf16.msra.mxu0 %v423_v15 }
  0x1f   :  { %185 = vmatpush.bf16.msra.mxu1 %v431_v16  ;;  %315 = vmatpush.bf16.msra.mxu2 %v440_v52 }
  0x21   :  { %173 = vmatmul.bf16.vlgmr.msra.gmra.mxu0 %v65_v17 }
  0x22   :  { %186 = vmatmul.bf16.vlgmr.msra.gmra.mxu1 %v66_v18 }
  0x23   :  { %316 = vmatpush.bf16.msra.mxu2 %v439_v54 }
  0x9e   :  { %v174_v23 = vpop.f32.mrf.mxu0 }
  0x9f   :  { %v187_v24 = vpop.f32.mrf.mxu1  ;;  %v175_v25 = vadd.f32 %v448_v21, %v174_v23 }
  0xa1   :  { %v188_v26 = vadd.f32 %v187_v24, %v175_v25 }
  0xa3   :  { %v192_v29 = vsel %vm191_vm0, %v188_v26, 0.0 }
  0xa4   :  { %v193_v30 = vrot.slane %v192_v29, 4 }
  0xa6   :  { %v194_v32 = vadd.f32 %v193_v30, %v192_v29  ;;  %v176_v33 = vpop.f32.mrf.mxu0 }
  0xa7   :  { %v189_v34 = vpop.f32.mrf.mxu1 }
  0xa8   :  { %v195_v36 = vrot.slane %v194_v32, 2 }
  0xaa   :  { %v196_v38 = vadd.f32 %v195_v36, %v194_v32 }
  0xac   :  { %v197_v40 = vrot.slane %v196_v38, 1 }
  0xae   :  { %v198_v42 = vadd.f32 %v197_v40, %v196_v38 }
  0xb0   :  { %v206_v44 = vmul.f32 %v205_v41, %v198_v42 }
  0xb2   :  { %v207_v45 = vsub.f32 %v188_v26, %v206_v44 }
  0xb4   :  { %v208_v47 = vmul.f32 %v207_v45, %v207_v45 }
  0xb6   :  { %v209_v48 = vsel %vm191_vm0, %v208_v47, 0.0 }
  0xb7   :  { %v210_v50 = vrot.slane %v209_v48, 4 }
  0xb9   :  { %v211_v51 = vadd.f32 %v210_v50, %v209_v48 }
  0xbb   :  { %v212_v53 = vrot.slane %v211_v51, 2 }
  0xbd   :  { %v213_v55 = vadd.f32 %v212_v53, %v211_v51 }
  0xbf   :  { %v214_v56 = vrot.slane %v213_v55, 1 }
  0xc1   :  { %v215_v57 = vadd.f32 %v214_v56, %v213_v55 }
  0xc3   :  { %v216_v58 = vmul.f32 %v215_v57, %v205_v41 }
  0xc5   :  { %v217_v59 = vadd.f32 1e-05, %v216_v58 }
  0xc7   :  { %454 = vrsqrt.f32 %v217_v59  ;;  %vm224_vm3 = vweird.f32 %v217_v59 }
  0xcd   :  { %v455_v60 = vpop.eup %454 }
  0xce   :  { %v219_v61 = vmul.f32 %v455_v60, %v217_v59  ;;  %vm225_vm2 = vweird.f32 %v455_v60 }
  0xcf   :  { %vm226_vm4 = vmor %vm224_vm3, %vm225_vm2 }
  0xd0   :  { %v220_v62 = vmul.f32 %v455_v60, %v219_v61 }
  0xd2   :  { %v221_v63 = vmul.f32 0.5, %v220_v62 }
  0xd4   :  { %v222_v0 = vsub.f32 1.5, %v221_v63 }
  0xd6   :  { %v223_v1 = vmul.f32 %v455_v60, %v222_v0 }
  0xd8   :  { %v227_v3 = vsel %vm226_vm4, %v455_v60, %v223_v1 }
  0xd9   :  { %v228_v4 = vmul.f32 %v227_v3, %v207_v45 }
  0xdb   :  { %v233_v6 = vmul.f32 %v449_v2, %v228_v4 }
  0xdd   :  { %v238_v7 = vadd.f32 %v450_v5, %v233_v6 }
  0xdf   :  { %v239_v8 = vmax.f32 %v238_v7, 0.0 }
  0xe1   :  { %v240_v9 = vpack.c.bf16 %v239_v8, %v239_v8 }
  0xe3   :  { %317 = vmatmul.bf16.vlgmr.msra.gmra.mxu2 %v240_v9 }
 0x166   :  { %v318_v11 = vpop.f32.mrf.mxu2 }
 0x167   :  { %v319_v12 = vadd.f32 %v451_v10, %v318_v11 }
 0x169   :  { %322 = vst [vmem:[%s596_s7] sm:$0x3] %v319_v12 }
 0x16e   :  { %v320_v13 = vpop.f32.mrf.mxu2 }

// kernel: wave_byol_forward.13
= control target key start
LH: loop header
LB: loop body
LE: loop exit
PB: predicated region body
PF: predicated region fallthrough
CT: control target
= control target key end

     0   :  { %vm40_vm0 = vcmask 130048   ;;  %v248_v2 = vmov 2.0   ;;  %vm57_vm1 = vcmask 1041408   ;;  %s336_s1 = inlined_call_operand.vmem [shape: bf16[16,128], index: 1, kind: input, shape index: {}]   ;;  %s337_s0 = inlined_call_operand.vmem [shape: bf16[2,16], index: 0, kind: input, shape index: {}]   ;;  %s338_s2 = inlined_call_operand.vmem [shape: f32[1,128], index: 2, kind: input, shape index: {}]   ;;  %s339_s3 = inlined_call_operand.vmem [shape: f32[1,128], index: 3, kind: input, shape index: {}]   ;;  %s340_s4 = inlined_call_operand.vmem [shape: f32[1,128], index: 4, kind: input, shape index: {}]   ;;  %s341_s6 = inlined_call_operand.vmem [shape: f32[1,128], index: 6, kind: input, shape index: {}]   ;;  %s342_s5 = inlined_call_operand.vmem [shape: bf16[128,128], index: 5, kind: input, shape index: {}]   ;;  %s343_s7 = inlined_call_operand.vmem [shape: f32[2,128], index: 7, kind: output, shape index: {}]  }
   0x1   :  { %v230_v0 = vld [vmem:[%s336_s1] sm:$0xff]  ;;  %244 = vrcp.f32 %v248_v2  ;;  %v238_v9 = vld [vmem:[%s342_s5 + $0x38] sm:$0xff]  ;;  %v237_v14 = vld [vmem:[%s342_s5 + $0x30] sm:$0xff] }
   0x2   :  { %51 = vmatpush.bf16.msra.mxu0 %v230_v0  ;;  %v27_v1 = vld [vmem:[%s337_s0] sm:$0x1]  ;;  %175 = vmatpush.bf16.msra.mxu1 %v238_v9  ;;  %v236_v19 = vld [vmem:[%s342_s5 + $0x28] sm:$0xff]  ;;  %v234_v26 = vld [vmem:[%s342_s5 + $0x18] sm:$0xff] }
   0x3   :  { %v240_v4 = vld [vmem:[%s338_s2] ss:$0 sm:$0xff]  ;;  %v233_v29 = vld [vmem:[%s342_s5 + $0x10] sm:$0xff]  ;;  %v232_v32 = vld [vmem:[%s342_s5 + $0x8] sm:$0xff] }
   0x4   :  { %v235_v23 = vld [vmem:[%s342_s5 + $0x20] sm:$0xff] }
   0x5   :  { %197 = vmatmul.msk.bf16.vlgmr.msra.gmra.mxu0 %vm40_vm0, %v27_v1  ;;  %v231_v34 = vld [vmem:[%s342_s5] sm:$0xff] }
   0x6   :  { %176 = vmatpush.bf16.msra.mxu1 %v237_v14  ;;  %v241_v46 = vld [vmem:[%s339_s3] ss:$0 sm:$0xff] }
   0x7   :  { %v245_v3 = vpop.eup %244  ;;  %v242_v49 = vld [vmem:[%s340_s4] ss:$0 sm:$0xff] }
   0x8   :  { %v66_v5 = vmul.f32 2.0, %v245_v3  ;;  %vm70_vm2 = vweird.f32 %v245_v3  ;;  %v243_v54 = vld [vmem:[%s341_s6] ss:$0 sm:$0xff] }
   0xa   :  { %v67_v8 = vsub.f32 1.0, %v66_v5  ;;  %177 = vmatpush.bf16.msra.mxu1 %v236_v19 }
   0xc   :  { %v68_v12 = vmul.f32 %v245_v3, %v67_v8 }
   0xe   :  { %v69_v17 = vadd.f32 %v245_v3, %v68_v12  ;;  %178 = vmatpush.bf16.msra.mxu1 %v235_v23 }
  0x10   :  { %v71_v21 = vsel %vm70_vm2, %v245_v3, %v69_v17 }
  0x12   :  { %179 = vmatpush.bf16.msra.mxu1 %v234_v26 }
  0x16   :  { %180 = vmatpush.bf16.msra.mxu1 %v233_v29 }
  0x1a   :  { %181 = vmatpush.bf16.msra.mxu1 %v232_v32 }
  0x1e   :  { %182 = vmatpush.bf16.msra.mxu1 %v231_v34 }
  0x82   :  { %v53_v6 = vpop.f32.mrf.mxu0 }
  0x83   :  { %v54_v7 = vadd.f32 %v240_v4, %v53_v6 }
  0x85   :  { %v58_v10 = vsel %vm57_vm1, %v54_v7, 0.0 }
  0x86   :  { %v59_v11 = vrot.slane %v58_v10, 4 }
  0x88   :  { %v60_v13 = vadd.f32 %v59_v11, %v58_v10 }
  0x8a   :  { %v61_v15 = vrot.slane %v60_v13, 2  ;;  %v55_v16 = vpop.f32.mrf.mxu0 }
  0x8c   :  { %v62_v18 = vadd.f32 %v61_v15, %v60_v13 }
  0x8e   :  { %v63_v20 = vrot.slane %v62_v18, 1 }
  0x90   :  { %v64_v22 = vadd.f32 %v63_v20, %v62_v18 }
  0x92   :  { %v72_v24 = vmul.f32 %v71_v21, %v64_v22 }
  0x94   :  { %v73_v25 = vsub.f32 %v54_v7, %v72_v24 }
  0x96   :  { %v74_v27 = vmul.f32 %v73_v25, %v73_v25 }
  0x98   :  { %v75_v28 = vsel %vm57_vm1, %v74_v27, 0.0 }
  0x99   :  { %v76_v30 = vrot.slane %v75_v28, 4 }
  0x9b   :  { %v77_v31 = vadd.f32 %v76_v30, %v75_v28 }
  0x9d   :  { %v78_v33 = vrot.slane %v77_v31, 2 }
  0x9f   :  { %v79_v35 = vadd.f32 %v78_v33, %v77_v31 }
  0xa1   :  { %v80_v36 = vrot.slane %v79_v35, 1 }
  0xa3   :  { %v81_v37 = vadd.f32 %v80_v36, %v79_v35 }
  0xa5   :  { %v82_v38 = vmul.f32 %v81_v37, %v71_v21 }
  0xa7   :  { %v83_v39 = vadd.f32 1e-05, %v82_v38 }
  0xa9   :  { %246 = vrsqrt.f32 %v83_v39  ;;  %vm90_vm4 = vweird.f32 %v83_v39 }
  0xaf   :  { %v247_v40 = vpop.eup %246 }
  0xb0   :  { %v85_v41 = vmul.f32 %v247_v40, %v83_v39  ;;  %vm91_vm3 = vweird.f32 %v247_v40 }
  0xb1   :  { %vm92_vm5 = vmor %vm90_vm4, %vm91_vm3 }
  0xb2   :  { %v86_v42 = vmul.f32 %v247_v40, %v85_v41 }
  0xb4   :  { %v87_v43 = vmul.f32 0.5, %v86_v42 }
  0xb6   :  { %v88_v44 = vsub.f32 1.5, %v87_v43 }
  0xb8   :  { %v89_v45 = vmul.f32 %v247_v40, %v88_v44 }
  0xba   :  { %v93_v47 = vsel %vm92_vm5, %v247_v40, %v89_v45 }
  0xbb   :  { %v94_v48 = vmul.f32 %v93_v47, %v73_v25 }
  0xbd   :  { %v99_v50 = vmul.f32 %v241_v46, %v94_v48 }
  0xbf   :  { %v104_v51 = vadd.f32 %v242_v49, %v99_v50 }
  0xc1   :  { %v105_v52 = vmax.f32 %v104_v51, 0.0 }
  0xc3   :  { %v106_v53 = vpack.c.bf16 %v105_v52, %v105_v52 }
  0xc5   :  { %183 = vmatmul.bf16.vlgmr.msra.gmra.mxu1 %v106_v53 }
 0x142   :  { %v184_v55 = vpop.f32.mrf.mxu1 }
 0x143   :  { %v185_v56 = vadd.f32 %v243_v54, %v184_v55 }
 0x145   :  { %188 = vst [vmem:[%s343_s7] sm:$0x3] %v185_v56 }
 0x14a   :  { %v186_v57 = vpop.f32.mrf.mxu1 }

</bundles_post_ra>
